<compile_context>
chip_gen: v7x
topology: tpu7x:2x2x1
jax: 0.10.0
libtpu: 0.0.40
codegen_flags: <defaults>
</compile_context>

<pallas_src>
import functools

import jax
import jax.numpy as jnp
from jax import lax
from jax.experimental import pallas as pl
from jax.experimental.pallas import tpu as pltpu


# ----------------------------------------------------------------------------- kernel

def _encoder_zinb_kernel(
    x_ref, x1_ref,                   # (TM, D0) f32 input row tiles (clean / noisy)
    w1_ref, b1_ref, w2_ref, b2_ref,  # encoder weights (bf16, [D0,D1]) / biases (f32, [1,D1])
    wd_ref, bd_ref,                  # decoder hidden (bf16, [D1,H]) / bias (f32, [1,H])
    wh_ref, bh_ref,                  # fused pi|disp|mean heads (bf16, [H,3*D0]) / (f32, [1,3*D0])
    out1_ref, out2_ref, pi_ref, disp_ref, mean_ref,
    *, d0,
):
    x = x_ref[...]
    x1 = x1_ref[...]

    # ---- encoder: two Linear layers (bf16 MXU, f32 accumulate) + L2 row-normalize
    o1 = jnp.dot(x1.astype(jnp.bfloat16), w1_ref[...],
                 preferred_element_type=jnp.float32) + b1_ref[...]
    o2 = jnp.dot(x.astype(jnp.bfloat16), w2_ref[...],
                 preferred_element_type=jnp.float32) + b2_ref[...]

    # F.normalize(p=2, dim=1): v / max(||v||, 1e-12) == v * rsqrt(max(||v||^2, 1e-24))
    o1n = o1 * lax.rsqrt(jnp.maximum(jnp.sum(o1 * o1, axis=1, keepdims=True), 1e-24))
    o2n = o2 * lax.rsqrt(jnp.maximum(jnp.sum(o2 * o2, axis=1, keepdims=True), 1e-24))
    out1_ref[...] = o1n.astype(out1_ref.dtype)
    out2_ref[...] = o2n.astype(out2_ref.dtype)

    z = (o1n + o2n) * 0.5

    # ---- ZINB decoder: hidden Linear + ReLU, then ONE fused 3-head matmul ----
    h = jnp.dot(z.astype(jnp.bfloat16), wd_ref[...],
                preferred_element_type=jnp.float32) + bd_ref[...]
    h = jnp.maximum(h, 0.0)

    heads = jnp.dot(h.astype(jnp.bfloat16), wh_ref[...],
                    preferred_element_type=jnp.float32) + bh_ref[...]

    # Interleave compute -> store per head to bound vreg live ranges.
    pi_lin = heads[:, 0:d0]
    pi = 1.0 / (1.0 + jnp.exp(-pi_lin))                            # sigmoid
    pi_ref[...] = pi.astype(pi_ref.dtype)

    disp_lin = heads[:, d0:2 * d0]
    softplus = jnp.maximum(disp_lin, 0.0) + jnp.log1p(jnp.exp(-jnp.abs(disp_lin)))
    disp = jnp.clip(softplus, 1e-4, 1e4)                           # DispAct: clamp(softplus)
    disp_ref[...] = disp.astype(disp_ref.dtype)

    mean_lin = heads[:, 2 * d0:3 * d0]
    mean = jnp.clip(jnp.exp(mean_lin), 1e-5, 1e6)                  # MeanAct: clamp(exp)
    mean_ref[...] = mean.astype(mean_ref.dtype)


# ----------------------------------------------------------------------------- params

def init_params(key, d0, d1, hidden):
    """Deterministic parameter init, PyTorch nn.Linear layout ([out, in])."""
    ks = jax.random.split(key, 12)

    def lin(kw, kb, fan_in, fan_out):
        bound = 1.0 / jnp.sqrt(float(fan_in))
        w = jax.random.uniform(kw, (fan_out, fan_in), jnp.float32, -bound, bound)
        b = jax.random.uniform(kb, (fan_out,), jnp.float32, -bound, bound)
        return w, b

    p = {}
    p["w1"], p["b1"] = lin(ks[0], ks[1], d0, d1)              # layers1
    p["w2"], p["b2"] = lin(ks[2], ks[3], d0, d1)              # layers2
    p["wd"], p["bd"] = lin(ks[4], ks[5], d1, hidden)          # decoder hidden
    p["wpi"], p["bpi"] = lin(ks[6], ks[7], hidden, d0)        # pi head
    p["wdisp"], p["bdisp"] = lin(ks[8], ks[9], hidden, d0)    # disp head
    p["wmean"], p["bmean"] = lin(ks[10], ks[11], hidden, d0)  # mean head
    return p


def prepare_params(p):
    """One-time layout prep (NOT per forward): transpose Linear weights to [in, out],
    cast matmul operands to bf16, fuse the three decoder heads, reshape biases to rows."""
    d1 = p["w1"].shape[0]
    h = p["wd"].shape[0]
    d0 = p["w1"].shape[1]
    return {
        "w1t": p["w1"].T.astype(jnp.bfloat16),
        "w2t": p["w2"].T.astype(jnp.bfloat16),
        "wdt": p["wd"].T.astype(jnp.bfloat16),
        "wht": jnp.concatenate(
            [p["wpi"].T, p["wdisp"].T, p["wmean"].T], axis=1).astype(jnp.bfloat16),
        "b1": p["b1"].reshape(1, d1).astype(jnp.float32),
        "b2": p["b2"].reshape(1, d1).astype(jnp.float32),
        "bd": p["bd"].reshape(1, h).astype(jnp.float32),
        "bh": jnp.concatenate(
            [p["bpi"], p["bdisp"], p["bmean"]]).reshape(1, 3 * d0).astype(jnp.float32),
    }


# ----------------------------------------------------------------------------- sizing

def _vmem_footprint_bytes(tm, d0, d1, h):
    bf16, f32 = 2, 4
    # resident weights/biases (x2 for pipeline buffering conservatism)
    w = 2 * bf16 * (2 * d0 * d1 + d1 * h + h * 3 * d0)
    b = 2 * f32 * (2 * d1 + h + 3 * d0)
    # streamed tiles, double buffered: x, x1 in; out1/out2/pi/disp/mean out
    tiles = 2 * f32 * tm * (2 * d0 + 2 * d1 + 3 * d0)
    # in-kernel intermediates (o1/o2, z, h, heads)
    inter = f32 * tm * (3 * d1 + h + 3 * d0)
    return w + b + tiles + inter


def _choose_tm(n, d0, d1, h, budget_bytes):
    """Largest power-of-two row tile (multiple of 8, <= 1024) fitting the VMEM budget."""
    cap = min(1024, ((n + 7) // 8) * 8)
    tm, t = 8, 8
    while t <= cap:
        if _vmem_footprint_bytes(t, d0, d1, h) <= budget_bytes:
            tm = t
        t *= 2
    return tm


# ----------------------------------------------------------------------------- forward

def encoder_net_forward(x, prep, noise_lamda, seed=0):
    N, D0 = x.shape
    D1 = prep["w1t"].shape[1]
    H = prep["wdt"].shape[1]

    # Noise is drawn once per forward (outside the kernel), mirroring the original
    # module's numpy draw. x1 = x + noise_lamda * N(0,1).
    noise = jax.random.normal(jax.random.PRNGKey(seed), x.shape, dtype=jnp.float32)
    x1 = x + jnp.float32(noise_lamda) * noise

    # VMEM-budgeted row tile; budget kept <= 40 MiB so it is safe on every generation
    # (v7x has 64 MiB physical VMEM; v5e/v6e have 128 MiB).
    budget = 40 * 1024 * 1024
    TM = _choose_tm(N, D0, D1, H, budget)
    n_pad = ((N + TM - 1) // TM) * TM          # pad remainder rows (sliced off below)
    if n_pad != N:
        x_p = jnp.pad(x, ((0, n_pad - N), (0, 0)))
        x1_p = jnp.pad(x1, ((0, n_pad - N), (0, 0)))
    else:
        x_p, x1_p = x, x1
    grid = (n_pad // TM,)

    def row_spec(cols):
        return pl.BlockSpec((TM, cols), lambda i: (i, 0))

    def whole(rows, cols):
        return pl.BlockSpec((rows, cols), lambda i: (0, 0))

    in_specs = [
        row_spec(D0), row_spec(D0),          # x, x1
        whole(D0, D1), whole(1, D1),         # w1t, b1
        whole(D0, D1), whole(1, D1),         # w2t, b2
        whole(D1, H), whole(1, H),           # wdt, bd
        whole(H, 3 * D0), whole(1, 3 * D0),  # wht, bh
    ]
    out_specs = [
        row_spec(D1), row_spec(D1),                 # out1, out2
        row_spec(D0), row_spec(D0), row_spec(D0),   # pi, disp, mean
    ]
    out_shape = (
        jax.ShapeDtypeStruct((n_pad, D1), jnp.float32),
        jax.ShapeDtypeStruct((n_pad, D1), jnp.float32),
        jax.ShapeDtypeStruct((n_pad, D0), jnp.float32),
        jax.ShapeDtypeStruct((n_pad, D0), jnp.float32),
        jax.ShapeDtypeStruct((n_pad, D0), jnp.float32),
    )

    vmem_limit = int(min(max(_vmem_footprint_bytes(TM, D0, D1, H) * 3 // 2,
                             32 * 1024 * 1024),
                         48 * 1024 * 1024))

    kernel = functools.partial(_encoder_zinb_kernel, d0=int(D0))

    out1, out2, pi, disp, mean = pl.pallas_call(
        kernel,
        grid=grid,
        in_specs=in_specs,
        out_specs=out_specs,
        out_shape=out_shape,
        compiler_params=pltpu.CompilerParams(
            dimension_semantics=("parallel",),   # row tiles shard across v7x TensorCores
            vmem_limit_bytes=vmem_limit,
        ),
    )(x_p, x1_p, prep["w1t"], prep["b1"], prep["w2t"], prep["b2"],
      prep["wdt"], prep["bd"], prep["wht"], prep["bh"])

    if n_pad != N:
        out1, out2, pi, disp, mean = (a[:N] for a in (out1, out2, pi, disp, mean))

    # Coef: constructed lazily per call (not stored as a dense parameter).
    # TODO(synk): for large N (~10k cells) keep this factorized (scalar * ones) at the
    # consumer instead of materializing an N x N constant.
    coef = jnp.full((N, N), 1e-4, dtype=jnp.float32)

    return out1, out2, pi, disp, mean, coef


# ----------------------------------------------------------------------------- demo

if __name__ == "__main__":
    # Small shapes consistent with the module: N cells, dims=[D0, D1], decoder hidden H.
    N, D0, D1, H = 8, 32, 16, 64
    noise_lamda = 0.5

    key = jax.random.PRNGKey(0)
    k_x, k_param = jax.random.split(key)

    x = jax.random.normal(k_x, (N, D0), dtype=jnp.float32)
    raw_params = init_params(k_param, D0, D1, H)
    prep = prepare_params(raw_params)      # one-time layout prep (outside the forward)

    outs = encoder_net_forward(x, prep, noise_lamda, seed=0)
    outs = jax.block_until_ready(outs)

    out1, out2, pi, disp, mean, coef = outs
    assert out1.shape == (N, D1) and out2.shape == (N, D1)
    assert pi.shape == (N, D0) and disp.shape == (N, D0) and mean.shape == (N, D0)
    assert coef.shape == (N, N)
    for a in (out1, out2, pi, disp, mean):
        assert bool(jnp.all(jnp.isfinite(a)))
    # range sanity for the ZINB heads
    assert bool(jnp.all((pi >= 0.0) & (pi <= 1.0)))
    assert bool(jnp.all((disp >= 1e-4) & (disp <= 1e4)))
    assert bool(jnp.all((mean >= 1e-5) & (mean <= 1e6)))
    print("KERNEL_OK")
</pallas_src>

<mosaic_0001>
module attributes {stable_mosaic.version = 11 : i64} {
  func.func @_encoder_zinb_kernel(%arg0: i32, %arg1: memref<8x32xf32, #tpu.memory_space<vmem>>, %arg2: memref<8x32xf32, #tpu.memory_space<vmem>>, %arg3: memref<32x16xbf16, #tpu.memory_space<vmem>>, %arg4: memref<1x16xf32, #tpu.memory_space<vmem>>, %arg5: memref<32x16xbf16, #tpu.memory_space<vmem>>, %arg6: memref<1x16xf32, #tpu.memory_space<vmem>>, %arg7: memref<16x64xbf16, #tpu.memory_space<vmem>>, %arg8: memref<1x64xf32, #tpu.memory_space<vmem>>, %arg9: memref<64x96xbf16, #tpu.memory_space<vmem>>, %arg10: memref<1x96xf32, #tpu.memory_space<vmem>>, %arg11: memref<8x16xf32, #tpu.memory_space<vmem>>, %arg12: memref<8x16xf32, #tpu.memory_space<vmem>>, %arg13: memref<8x32xf32, #tpu.memory_space<vmem>>, %arg14: memref<8x32xf32, #tpu.memory_space<vmem>>, %arg15: memref<8x32xf32, #tpu.memory_space<vmem>>) attributes {dimension_semantics = [#tpu.dimension_semantics<parallel>], iteration_bounds = array<i64: 1>, scalar_prefetch = 0 : i64, scratch_operands = 0 : i64, tpu.core_type = #tpu.core_type<tc>, window_params = [{transform_indices = @transform_0, window_bounds = array<i64: 8, 32>}, {transform_indices = @transform_1, window_bounds = array<i64: 8, 32>}, {pipeline_mode = #tpu.pipeline_mode<synchronous>, transform_indices = @transform_2, window_bounds = array<i64: 32, 16>}, {pipeline_mode = #tpu.pipeline_mode<synchronous>, transform_indices = @transform_3, window_bounds = array<i64: 1, 16>}, {pipeline_mode = #tpu.pipeline_mode<synchronous>, transform_indices = @transform_4, window_bounds = array<i64: 32, 16>}, {pipeline_mode = #tpu.pipeline_mode<synchronous>, transform_indices = @transform_5, window_bounds = array<i64: 1, 16>}, {pipeline_mode = #tpu.pipeline_mode<synchronous>, transform_indices = @transform_6, window_bounds = array<i64: 16, 64>}, {pipeline_mode = #tpu.pipeline_mode<synchronous>, transform_indices = @transform_7, window_bounds = array<i64: 1, 64>}, {pipeline_mode = #tpu.pipeline_mode<synchronous>, transform_indices = @transform_8, window_bounds = array<i64: 64, 96>}, {pipeline_mode = #tpu.pipeline_mode<synchronous>, transform_indices = @transform_9, window_bounds = array<i64: 1, 96>}, {transform_indices = @transform_10, window_bounds = array<i64: 8, 16>}, {transform_indices = @transform_11, window_bounds = array<i64: 8, 16>}, {transform_indices = @transform_12, window_bounds = array<i64: 8, 32>}, {transform_indices = @transform_13, window_bounds = array<i64: 8, 32>}, {transform_indices = @transform_14, window_bounds = array<i64: 8, 32>}]} {
    %c0 = arith.constant 0 : index
    %c0_0 = arith.constant 0 : index
    %0 = vector.load %arg1[%c0, %c0_0] : memref<8x32xf32, #tpu.memory_space<vmem>>, vector<8x32xf32>
    %c0_1 = arith.constant 0 : index
    %c0_2 = arith.constant 0 : index
    %1 = vector.load %arg2[%c0_1, %c0_2] : memref<8x32xf32, #tpu.memory_space<vmem>>, vector<8x32xf32>
    %2 = arith.truncf %1 : vector<8x32xf32> to vector<8x32xbf16>
    %c0_3 = arith.constant 0 : index
    %c0_4 = arith.constant 0 : index
    %3 = vector.load %arg3[%c0_3, %c0_4] : memref<32x16xbf16, #tpu.memory_space<vmem>>, vector<32x16xbf16>
    %cst = arith.constant dense<0.000000e+00> : vector<8x16xf32>
    %4 = tpu.matmul %2, %3, %cst {dimension_numbers = #tpu.dot_dimension_numbers<[1], [0], [0], [1], [0, 0, 1, 1], [], []>} : vector<8x32xbf16>, vector<32x16xbf16>, vector<8x16xf32> -> vector<8x16xf32>
    %c0_5 = arith.constant 0 : index
    %c0_6 = arith.constant 0 : index
    %5 = vector.load %arg4[%c0_5, %c0_6] : memref<1x16xf32, #tpu.memory_space<vmem>>, vector<1x16xf32>
    %6 = vector.broadcast %5 : vector<1x16xf32> to vector<8x16xf32>
    %7 = arith.addf %4, %6 : vector<8x16xf32>
    %8 = arith.truncf %0 : vector<8x32xf32> to vector<8x32xbf16>
    %c0_7 = arith.constant 0 : index
    %c0_8 = arith.constant 0 : index
    %9 = vector.load %arg5[%c0_7, %c0_8] : memref<32x16xbf16, #tpu.memory_space<vmem>>, vector<32x16xbf16>
    %cst_9 = arith.constant dense<0.000000e+00> : vector<8x16xf32>
    %10 = tpu.matmul %8, %9, %cst_9 {dimension_numbers = #tpu.dot_dimension_numbers<[1], [0], [0], [1], [0, 0, 1, 1], [], []>} : vector<8x32xbf16>, vector<32x16xbf16>, vector<8x16xf32> -> vector<8x16xf32>
    %c0_10 = arith.constant 0 : index
    %c0_11 = arith.constant 0 : index
    %11 = vector.load %arg6[%c0_10, %c0_11] : memref<1x16xf32, #tpu.memory_space<vmem>>, vector<1x16xf32>
    %12 = vector.broadcast %11 : vector<1x16xf32> to vector<8x16xf32>
    %13 = arith.addf %10, %12 : vector<8x16xf32>
    %14 = arith.mulf %7, %7 : vector<8x16xf32>
    %cst_12 = arith.constant dense<0.000000e+00> : vector<8xf32>
    %15 = vector.multi_reduction <add>, %14, %cst_12 [1] : vector<8x16xf32> to vector<8xf32>
    %16 = vector.shape_cast %15 : vector<8xf32> to vector<8x1xf32>
    %cst_13 = arith.constant 1.000000e-24 : f32
    %17 = vector.broadcast %cst_13 : f32 to vector<8x1xf32>
    %18 = arith.maximumf %16, %17 : vector<8x1xf32>
    %19 = math.rsqrt %18 : vector<8x1xf32>
    %20 = vector.broadcast %19 : vector<8x1xf32> to vector<8x16xf32>
    %21 = arith.mulf %7, %20 : vector<8x16xf32>
    %22 = arith.mulf %13, %13 : vector<8x16xf32>
    %cst_14 = arith.constant dense<0.000000e+00> : vector<8xf32>
    %23 = vector.multi_reduction <add>, %22, %cst_14 [1] : vector<8x16xf32> to vector<8xf32>
    %24 = vector.shape_cast %23 : vector<8xf32> to vector<8x1xf32>
    %cst_15 = arith.constant 1.000000e-24 : f32
    %25 = vector.broadcast %cst_15 : f32 to vector<8x1xf32>
    %26 = arith.maximumf %24, %25 : vector<8x1xf32>
    %27 = math.rsqrt %26 : vector<8x1xf32>
    %28 = vector.broadcast %27 : vector<8x1xf32> to vector<8x16xf32>
    %29 = arith.mulf %13, %28 : vector<8x16xf32>
    %c0_16 = arith.constant 0 : index
    %c0_17 = arith.constant 0 : index
    %30 = vector.load %arg11[%c0_16, %c0_17] : memref<8x16xf32, #tpu.memory_space<vmem>>, vector<8x16xf32>
    tpu.vector_store %arg11[%c0_16, %c0_17], %21 {strides = array<i32>} : memref<8x16xf32, #tpu.memory_space<vmem>>, vector<8x16xf32>,
    %c0_18 = arith.constant 0 : index
    %c0_19 = arith.constant 0 : index
    %31 = vector.load %arg12[%c0_18, %c0_19] : memref<8x16xf32, #tpu.memory_space<vmem>>, vector<8x16xf32>
    tpu.vector_store %arg12[%c0_18, %c0_19], %29 {strides = array<i32>} : memref<8x16xf32, #tpu.memory_space<vmem>>, vector<8x16xf32>,
    %32 = arith.addf %21, %29 : vector<8x16xf32>
    %cst_20 = arith.constant 5.000000e-01 : f32
    %33 = vector.broadcast %cst_20 : f32 to vector<8x16xf32>
    %34 = arith.mulf %32, %33 : vector<8x16xf32>
    %35 = arith.truncf %34 : vector<8x16xf32> to vector<8x16xbf16>
    %c0_21 = arith.constant 0 : index
    %c0_22 = arith.constant 0 : index
    %36 = vector.load %arg7[%c0_21, %c0_22] : memref<16x64xbf16, #tpu.memory_space<vmem>>, vector<16x64xbf16>
    %cst_23 = arith.constant dense<0.000000e+00> : vector<8x64xf32>
    %37 = tpu.matmul %35, %36, %cst_23 {dimension_numbers = #tpu.dot_dimension_numbers<[1], [0], [0], [1], [0, 0, 1, 1], [], []>} : vector<8x16xbf16>, vector<16x64xbf16>, vector<8x64xf32> -> vector<8x64xf32>
    %c0_24 = arith.constant 0 : index
    %c0_25 = arith.constant 0 : index
    %38 = vector.load %arg8[%c0_24, %c0_25] : memref<1x64xf32, #tpu.memory_space<vmem>>, vector<1x64xf32>
    %39 = vector.broadcast %38 : vector<1x64xf32> to vector<8x64xf32>
    %40 = arith.addf %37, %39 : vector<8x64xf32>
    %cst_26 = arith.constant 0.000000e+00 : f32
    %41 = vector.broadcast %cst_26 : f32 to vector<8x64xf32>
    %42 = arith.maximumf %40, %41 : vector<8x64xf32>
    %43 = arith.truncf %42 : vector<8x64xf32> to vector<8x64xbf16>
    %c0_27 = arith.constant 0 : index
    %c0_28 = arith.constant 0 : index
    %44 = vector.load %arg9[%c0_27, %c0_28] : memref<64x96xbf16, #tpu.memory_space<vmem>>, vector<64x96xbf16>
    %cst_29 = arith.constant dense<0.000000e+00> : vector<8x96xf32>
    %45 = tpu.matmul %43, %44, %cst_29 {dimension_numbers = #tpu.dot_dimension_numbers<[1], [0], [0], [1], [0, 0, 1, 1], [], []>} : vector<8x64xbf16>, vector<64x96xbf16>, vector<8x96xf32> -> vector<8x96xf32>
    %c0_30 = arith.constant 0 : index
    %c0_31 = arith.constant 0 : index
    %46 = vector.load %arg10[%c0_30, %c0_31] : memref<1x96xf32, #tpu.memory_space<vmem>>, vector<1x96xf32>
    %47 = vector.broadcast %46 : vector<1x96xf32> to vector<8x96xf32>
    %48 = arith.addf %45, %47 : vector<8x96xf32>
    %49 = vector.extract_strided_slice %48 {offsets = [0, 0], sizes = [8, 32], strides = [1, 1]} : vector<8x96xf32> to vector<8x32xf32>
    %cst_32 = arith.constant 0.000000e+00 : f32
    %50 = vector.broadcast %cst_32 : f32 to vector<8x32xf32>
    %51 = arith.subf %50, %49 : vector<8x32xf32>
    %52 = math.exp %51 : vector<8x32xf32>
    %cst_33 = arith.constant 1.000000e+00 : f32
    %53 = vector.broadcast %cst_33 : f32 to vector<8x32xf32>
    %54 = arith.addf %53, %52 : vector<8x32xf32>
    %cst_34 = arith.constant 1.000000e+00 : f32
    %55 = vector.broadcast %cst_34 : f32 to vector<8x32xf32>
    %56 = arith.divf %55, %54 : vector<8x32xf32>
    %c0_35 = arith.constant 0 : index
    %c0_36 = arith.constant 0 : index
    %57 = vector.load %arg13[%c0_35, %c0_36] : memref<8x32xf32, #tpu.memory_space<vmem>>, vector<8x32xf32>
    tpu.vector_store %arg13[%c0_35, %c0_36], %56 {strides = array<i32>} : memref<8x32xf32, #tpu.memory_space<vmem>>, vector<8x32xf32>,
    %58 = vector.extract_strided_slice %48 {offsets = [0, 32], sizes = [8, 32], strides = [1, 1]} : vector<8x96xf32> to vector<8x32xf32>
    %cst_37 = arith.constant 0.000000e+00 : f32
    %59 = vector.broadcast %cst_37 : f32 to vector<8x32xf32>
    %60 = arith.maximumf %58, %59 : vector<8x32xf32>
    %61 = math.absf %58 : vector<8x32xf32>
    %cst_38 = arith.constant 0.000000e+00 : f32
    %62 = vector.broadcast %cst_38 : f32 to vector<8x32xf32>
    %63 = arith.subf %62, %61 : vector<8x32xf32>
    %64 = math.exp %63 : vector<8x32xf32>
    %65 = math.log1p %64 : vector<8x32xf32>
    %66 = arith.addf %60, %65 : vector<8x32xf32>
    %cst_39 = arith.constant 9.99999974E-5 : f32
    %cst_40 = arith.constant 1.000000e+04 : f32
    %67 = vector.broadcast %cst_39 : f32 to vector<8x32xf32>
    %68 = arith.maximumf %67, %66 : vector<8x32xf32>
    %69 = vector.broadcast %cst_40 : f32 to vector<8x32xf32>
    %70 = arith.minimumf %69, %68 : vector<8x32xf32>
    %c0_41 = arith.constant 0 : index
    %c0_42 = arith.constant 0 : index
    %71 = vector.load %arg14[%c0_41, %c0_42] : memref<8x32xf32, #tpu.memory_space<vmem>>, vector<8x32xf32>
    tpu.vector_store %arg14[%c0_41, %c0_42], %70 {strides = array<i32>} : memref<8x32xf32, #tpu.memory_space<vmem>>, vector<8x32xf32>,
    %72 = vector.extract_strided_slice %48 {offsets = [0, 64], sizes = [8, 32], strides = [1, 1]} : vector<8x96xf32> to vector<8x32xf32>
    %73 = math.exp %72 : vector<8x32xf32>
    %cst_43 = arith.constant 9.99999974E-6 : f32
    %cst_44 = arith.constant 1.000000e+06 : f32
    %74 = vector.broadcast %cst_43 : f32 to vector<8x32xf32>
    %75 = arith.maximumf %74, %73 : vector<8x32xf32>
    %76 = vector.broadcast %cst_44 : f32 to vector<8x32xf32>
    %77 = arith.minimumf %76, %75 : vector<8x32xf32>
    %c0_45 = arith.constant 0 : index
    %c0_46 = arith.constant 0 : index
    %78 = vector.load %arg15[%c0_45, %c0_46] : memref<8x32xf32, #tpu.memory_space<vmem>>, vector<8x32xf32>
    tpu.vector_store %arg15[%c0_45, %c0_46], %77 {strides = array<i32>} : memref<8x32xf32, #tpu.memory_space<vmem>>, vector<8x32xf32>,
    return
  }
  func.func @transform_0(%arg0: i32) -> (i32, i32) {
    %c0_i32 = arith.constant 0 : i32
    %c0_i32_0 = arith.constant 0 : i32
    return %arg0, %c0_i32 : i32, i32
  }
  func.func @transform_1(%arg0: i32) -> (i32, i32) {
    %c0_i32 = arith.constant 0 : i32
    %c0_i32_0 = arith.constant 0 : i32
    return %arg0, %c0_i32 : i32, i32
  }
  func.func @transform_2(%arg0: i32) -> (i32, i32) {
    %c0_i32 = arith.constant 0 : i32
    %c0_i32_0 = arith.constant 0 : i32
    %c0_i32_1 = arith.constant 0 : i32
    return %c0_i32, %c0_i32_0 : i32, i32
  }
  func.func @transform_3(%arg0: i32) -> (i32, i32) {
    %c0_i32 = arith.constant 0 : i32
    %c0_i32_0 = arith.constant 0 : i32
    %c0_i32_1 = arith.constant 0 : i32
    return %c0_i32, %c0_i32_0 : i32, i32
  }
  func.func @transform_4(%arg0: i32) -> (i32, i32) {
    %c0_i32 = arith.constant 0 : i32
    %c0_i32_0 = arith.constant 0 : i32
    %c0_i32_1 = arith.constant 0 : i32
    return %c0_i32, %c0_i32_0 : i32, i32
  }
  func.func @transform_5(%arg0: i32) -> (i32, i32) {
    %c0_i32 = arith.constant 0 : i32
    %c0_i32_0 = arith.constant 0 : i32
    %c0_i32_1 = arith.constant 0 : i32
    return %c0_i32, %c0_i32_0 : i32, i32
  }
  func.func @transform_6(%arg0: i32) -> (i32, i32) {
    %c0_i32 = arith.constant 0 : i32
    %c0_i32_0 = arith.constant 0 : i32
    %c0_i32_1 = arith.constant 0 : i32
    return %c0_i32, %c0_i32_0 : i32, i32
  }
  func.func @transform_7(%arg0: i32) -> (i32, i32) {
    %c0_i32 = arith.constant 0 : i32
    %c0_i32_0 = arith.constant 0 : i32
    %c0_i32_1 = arith.constant 0 : i32
    return %c0_i32, %c0_i32_0 : i32, i32
  }
  func.func @transform_8(%arg0: i32) -> (i32, i32) {
    %c0_i32 = arith.constant 0 : i32
    %c0_i32_0 = arith.constant 0 : i32
    %c0_i32_1 = arith.constant 0 : i32
    return %c0_i32, %c0_i32_0 : i32, i32
  }
  func.func @transform_9(%arg0: i32) -> (i32, i32) {
    %c0_i32 = arith.constant 0 : i32
    %c0_i32_0 = arith.constant 0 : i32
    %c0_i32_1 = arith.constant 0 : i32
    return %c0_i32, %c0_i32_0 : i32, i32
  }
  func.func @transform_10(%arg0: i32) -> (i32, i32) {
    %c0_i32 = arith.constant 0 : i32
    %c0_i32_0 = arith.constant 0 : i32
    return %arg0, %c0_i32 : i32, i32
  }
  func.func @transform_11(%arg0: i32) -> (i32, i32) {
    %c0_i32 = arith.constant 0 : i32
    %c0_i32_0 = arith.constant 0 : i32
    return %arg0, %c0_i32 : i32, i32
  }
  func.func @transform_12(%arg0: i32) -> (i32, i32) {
    %c0_i32 = arith.constant 0 : i32
    %c0_i32_0 = arith.constant 0 : i32
    return %arg0, %c0_i32 : i32, i32
  }
  func.func @transform_13(%arg0: i32) -> (i32, i32) {
    %c0_i32 = arith.constant 0 : i32
    %c0_i32_0 = arith.constant 0 : i32
    return %arg0, %c0_i32 : i32, i32
  }
  func.func @transform_14(%arg0: i32) -> (i32, i32) {
    %c0_i32 = arith.constant 0 : i32
    %c0_i32_0 = arith.constant 0 : i32
    return %arg0, %c0_i32 : i32, i32
  }
}

</mosaic_0001>

<bundles_post_ra>
// kernel: tpu_custom_call.1
= control target key start
LH: loop header
LB: loop body
LE: loop exit
PB: predicated region body
PF: predicated region fallthrough
CT: control target
= control target key end

     0   :  { %20 = vsyncpa [#allocation3], 0  ;;  %s878_s0 = inlined_call_operand.vmem [shape: f32[8,32], index: 0, kind: input, shape index: {}]   ;;  %s879_s1 = inlined_call_operand.vmem [shape: f32[8,32], index: 1, kind: input, shape index: {}]   ;;  %s880_s2 = inlined_call_operand.vmem [shape: bf16[32,16], index: 2, kind: input, shape index: {}]   ;;  %s881_s3 = inlined_call_operand.vmem [shape: f32[1,16], index: 3, kind: input, shape index: {}]   ;;  %s882_s4 = inlined_call_operand.vmem [shape: bf16[32,16], index: 4, kind: input, shape index: {}]   ;;  %s883_s5 = inlined_call_operand.vmem [shape: f32[1,16], index: 5, kind: input, shape index: {}]   ;;  %s884_s6 = inlined_call_operand.vmem [shape: bf16[16,64], index: 6, kind: input, shape index: {}]   ;;  %s885_s7 = inlined_call_operand.vmem [shape: f32[1,64], index: 7, kind: input, shape index: {}]   ;;  %s886_s8 = inlined_call_operand.vmem [shape: bf16[64,96], index: 8, kind: input, shape index: {}]   ;;  %s887_s9 = inlined_call_operand.vmem [shape: f32[1,96], index: 9, kind: input, shape index: {}]   ;;  %s888_s10 = inlined_call_operand.hbm [shape: f32[8,16], index: 10, kind: output, shape index: {0}]   ;;  %s889_s11 = inlined_call_operand.hbm [shape: f32[8,16], index: 11, kind: output, shape index: {1}]   ;;  %s890_s12 = inlined_call_operand.hbm [shape: f32[8,32], index: 12, kind: output, shape index: {2}]   ;;  %s891_s13 = inlined_call_operand.hbm [shape: f32[8,32], index: 13, kind: output, shape index: {3}]   ;;  %s892_s14 = inlined_call_operand.hbm [shape: f32[8,32], index: 14, kind: output, shape index: {4}]  }
   0x1   :  { %21 = vsyncpa [#allocation5], 0  ;;  %v523_v0 = vld [vmem:[%s880_s2] sm:$0xff]   ;;  %v662_v1 = vmov 0.0   ;;  %v525_v3 = vld [vmem:[%s880_s2 + $0x8] sm:$0xff]   ;;  %vm663_vm0 = vmmov 0  }
   0x2   :  { %480 = vmatprep.subr.bf16.mxu0 %v662_v1  ;;  %488 = vmatprep.subr.bf16.mxu1 %v662_v1  ;;  %v524_v2 = vld [vmem:[%s882_s4] sm:$0xff]   ;;  %v526_v4 = vld [vmem:[%s882_s4 + $0x8] sm:$0xff]   ;;  %vm70_vm1 = vcmask 261120  }
   0x3   :  { %481 = vmatpush3.bf16.msra.mxu0 %v523_v0  ;;  %484 = vmatprep.mubr.msk.bf16.mxu0 %vm663_vm0, %v662_v1  ;;  %v45_v5 = vld [vmem:[%s879_s1] sm:$0xff] }
   0x4   :  { %489 = vmatpush3.bf16.msra.mxu1 %v524_v2  ;;  %482 = vmatprep.subr.bf16.mxu0 %v662_v1  ;;  %v44_v6 = vld [vmem:[%s878_s0] sm:$0xff]  ;;  %v46_v7 = vpack.c.bf16 %v45_v5, %v45_v5 }
   0x5   :  { %490 = vmatprep.subr.bf16.mxu1 %v662_v1  ;;  %492 = vmatprep.mubr.msk.bf16.mxu1 %vm663_vm0, %v662_v1  ;;  %v114_v8 = vpack.c.bf16 %v44_v6, %v44_v6 }
   0x7   :  { %483 = vmatpush3.bf16.msra.mxu0 %v525_v3 }
   0x8   :  { %491 = vmatpush3.bf16.msra.mxu1 %v526_v4  ;;  %496 = vmatprep.subr.bf16.mxu0 %v662_v1 }
   0x9   :  { %502 = vmatprep.subr.bf16.mxu1 %v662_v1 }
   0xa   :  { %22 = vsyncpa [#allocation8], 0  ;;  %485 = vmatmul.mubr.msk.bf16.vlgmr.msra.gmra.mrb[0].mxu0 %vm70_vm1, %v46_v7  ;;  %v450_v9 = vld [vmem:[%s881_s3] ss:$0 sm:$0xff]  ;;  %vm182_vm2 = vcmask 130048   ;;  %v529_v27 = vld [vmem:[%s886_s8 + $0x8] sm:$0xff]  }
   0xb   :  { %493 = vmatmul.mubr.msk.bf16.vlgmr.msra.gmra.mrb[0].mxu1 %vm70_vm1, %v114_v8  ;;  %498 = vmatprep.mubr.msk.bf16.mxu0 %vm663_vm0, %v662_v1  ;;  %v454_v10 = vld [vmem:[%s883_s5] ss:$0 sm:$0xff]  ;;  %v530_v39 = vld [vmem:[%s886_s8 + $0x10] sm:$0xff]   ;;  %v531_v40 = vld [vmem:[%s886_s8 + $0x18] sm:$0xff]   ;;  %vm300_vm3 = vcmask 523264  }
   0xc   :  { %510 = vmatprep.mubr.msk.bf16.mxu1 %vm663_vm0, %v662_v1  ;;  %v527_v25 = vld [vmem:[%s884_s6] sm:$0xff]  }
   0xd   :  { %497 = vmatpush3.bf16.msra.mxu0 %v527_v25  ;;  %v528_v26 = vld [vmem:[%s886_s8] sm:$0xff]  }
   0xe   :  { %503 = vmatpush3.bf16.msra.mxu1 %v528_v26  ;;  %v458_v41 = vld [vmem:[%s885_s7] ss:$0 sm:$0xff]  ;;  %s664_s7 = smov [#allocation4]  }
   0xf   :  { %504 = vmatprep.subr.bf16.mxu1 %v662_v1  ;;  %v461_v49 = vld [vmem:[%s887_s9] ss:$0 sm:$0xff]  ;;  %s398_s8 = sshll.u32 %s664_s7, 4  ;;  %s399_s8 = int_to_ptr.vmem [resolvable:$true] %s398_s8 }
  0x10   :  { %s546_s9 = scalar_lea.vmem %s399_s8, 128  ;;  %p551_p1 = scmp.lt.s32.totalorder %s399_s8, %s399_s8 }
  0x11   :  { %p547_p0 = scmp.ne.s32.totalorder %s399_s8, %s546_s9  ;;  %p552_p2 = scmp.lt.s32.totalorder %s546_s9, %s546_s9 }
  0x12   :  { %505 = vmatpush3.bf16.msra.mxu1 %v529_v27 }
  0x13   :  { %506 = vmatprep.subr.bf16.mxu1 %v662_v1  ;;  %p553_p3 = por %p552_p2, %p551_p1 }
  0x15   :  { %p554_p4 = pnand %p553_p3, %p547_p0 }
  0x16   :  { %507 = vmatpush3.bf16.msra.mxu1 %v530_v39 }
  0x17   :  { %508 = vmatprep.subr.bf16.mxu1 %v662_v1 }
  0x1a   :  { %509 = vmatpush3.bf16.msra.mxu1 %v531_v40 }
  0xdd   :  { %v108_v11 = vpop.f32.mrb[0].mxu0 }
  0xde   :  { %v109_v12 = vadd.f32 %v450_v9, %v108_v11  ;;  %v486_v13 = vpop.f32.mrb[1].mxu0  ;;  %v175_v14 = vpop.f32.mrb[0].mxu1 }
  0xdf   :  { %v176_v15 = vadd.f32 %v454_v10, %v175_v14  ;;  %v111_v16 = vpop.f32.mrb[2].mxu0  ;;  %v494_v17 = vpop.f32.mrb[1].mxu1 }
  0xe0   :  { %v487_v18 = vpop.f32.mrb[3].mxu0  ;;  %v178_v19 = vpop.f32.mrb[2].mxu1  ;;  %v181_v20 = vmul.f32 %v109_v12, %v109_v12 }
  0xe1   :  { %v495_v21 = vpop.f32.mrb[3].mxu1  ;;  %v189_v22 = vmul.f32 %v176_v15, %v176_v15 }
  0xe2   :  { %v183_v23 = vsel %vm182_vm2, %v181_v20, 0.0 }
  0xe3   :  { %184 = vadd.xlane.f32.xlu0 %v183_v23  ;;  %v190_v24 = vsel %vm182_vm2, %v189_v22, 0.0 }
  0xe7   :  { %191 = vadd.xlane.f32.xlu0 %v190_v24 }
 0x170   :  { %v185_v28 = vpop.xlane.xlu0 %184 }
 0x171   :  { %v186_v29 = vmax.f32 %v185_v28, 1e-24 }
 0x173   :  { %532 = vrsqrt.f32 %v186_v29 }
 0x174   :  { %v192_v30 = vpop.xlane.xlu0 %191 }
 0x175   :  { %v193_v31 = vmax.f32 %v192_v30, 1e-24 }
 0x177   :  { %534 = vrsqrt.f32 %v193_v31 }
 0x17d   :  { %v533_v32 = vpop.eup %532 }
 0x17e   :  { %v188_v33 = vmul.f32 %v533_v32, %v109_v12 }
 0x180   :  { %196 = vst.msk [vmem:[#allocation2] sm:$0xff] %vm182_vm2, %v188_v33 }
 0x181   :  { %v535_v34 = vpop.eup %534 }
 0x182   :  { %v195_v35 = vmul.f32 %v535_v34, %v176_v15 }
 0x184   :  { %197 = vst.msk [vmem:[#allocation4] sm:$0xff] %vm182_vm2, %v195_v35  ;;  %v198_v36 = vadd.f32 %v195_v35, %v188_v33 }
 0x186   :  { %v199_v37 = vmul.f32 0.5, %v198_v36 }
 0x188   :  { %v200_v38 = vpack.c.bf16 %v199_v37, %v199_v37 }
 0x18a   :  { %499 = vmatmul.mubr.msk.bf16.vlgmr.msra.gmra.mrb[4].mxu0 %vm182_vm2, %v200_v38 }
 0x25d   :  { %v253_v42 = vpop.f32.mrb[4].mxu0 }
 0x25e   :  { %v254_v43 = vadd.f32 %v458_v41, %v253_v42  ;;  %v500_v44 = vpop.f32.mrb[5].mxu0 }
 0x25f   :  { %v256_v45 = vpop.f32.mrb[6].mxu0 }
 0x260   :  { %v259_v46 = vmax.f32 %v254_v43, 0.0  ;;  %v501_v47 = vpop.f32.mrb[7].mxu0 }
 0x262   :  { %v260_v48 = vpack.c.bf16 %v259_v46, %v259_v46 }
 0x264   :  { %511 = vmatmul.mubr.msk.bf16.vlgmr.msra.gmra.mrb[4].mxu1 %vm300_vm3, %v260_v48 }
 0x337   :  { %v338_v50 = vpop.f32.mrb[4].mxu1 }
 0x338   :  { %v339_v51 = vadd.f32 %v461_v49, %v338_v50  ;;  %v512_v52 = vpop.f32.mrb[5].mxu1 }
 0x339   :  { %v341_v53 = vpop.f32.mrb[6].mxu1 }
 0x33a   :  { %v344_v54 = vsub.f32 0.0, %v339_v51  ;;  %v352_v55 = vand.u32 2147483647, %v339_v51  ;;  %v513_v56 = vpop.f32.mrb[7].mxu1  ;;  %v373_v0 = vmul.f32 1.442695, %v339_v51 }
 0x33b   :  { %v351_v8 = vmax.f32 %v339_v51, 0.0 }
 0x33c   :  { %v345_v57 = vmul.f32 1.442695, %v344_v54  ;;  %v353_v58 = vsub.f32 0.0, %v352_v55 }
 0x33e   :  { %536 = vpow2.f32 %v345_v57  ;;  %v354_v59 = vmul.f32 1.442695, %v353_v58 }
 0x340   :  { %538 = vpow2.f32 %v354_v59 }
 0x348   :  { %v537_v60 = vpop.eup %536 }
 0x349   :  { %v347_v61 = vadd.f32 1.0, %v537_v60 }
 0x34a   :  { %v539_v62 = vpop.eup %538 }
 0x34b   :  { %v356_v63 = vadd.f32 1.0, %v539_v62  ;;  %540 = vrcp.f32 %v347_v61  ;;  %v359_v1 = vmul.f32 -0.5, %v539_v62  ;;  %v362_v4 = vand.u32 2147483647, %v539_v62 }
 0x34d   :  { %542 = vlog2.f32 %v356_v63  ;;  %v360_v2 = vadd.f32 1.0, %v359_v1  ;;  %vm363_vm4 = vcmp.lt.f32.partialorder %v362_v4, 0.0004427343 }
 0x34e   :  { %544 = vpow2.f32 %v373_v0 }
 0x34f   :  { %v361_v7 = vmul.f32 %v539_v62, %v360_v2 }
 0x355   :  { %v541_v3 = vpop.eup %540 }
 0x356   :  { %350 = vst.msk [vmem:[#allocation6] sm:$0xff] %vm70_vm1, %v541_v3 }
 0x357   :  { %v543_v5 = vpop.eup %542 }
 0x358   :  { %v358_v6 = vmul.f32 0.6931472, %v543_v5 }
 0x359   :  { %557 = shalt.err (!%p554_p4)
}
 0x35a   :  { %s558_s22 = scalar_lea.hbm %s889_s11, 128 }
 0x35b   :  { %p559_p5 = scmp.ne.s32.totalorder %s889_s11, %s558_s22  ;;  %p562_p6 = scmp.lt.u32.totalorder %s558_s22, %s889_s11 }
 0x35d   :  { %p564_p7 = pnand %p562_p6, %p559_p5 }
 0x35f   :  { %567 = shalt.err (!%p564_p7)
}
 0x360   :  { %401 = dma.vmem_to_hbm [thread:$0]  %s399_s8, 128, %s889_s11, [#allocation5]   ;;  %v364_v9 = vsel %vm363_vm4, %v361_v7, %v358_v6  ;;  %v545_v11 = vpop.eup %544 }
 0x361   :  { %v365_v10 = vadd.f32 %v364_v9, %v351_v8  ;;  %s665_s3 = smov [#allocation2]   ;;  %s666_s25 = smov [#allocation6]  }
 0x362   :  { %s388_s5 = sshll.u32 %s665_s3, 4  ;;  %s408_s26 = sshll.u32 %s666_s25, 4  ;;  %s389_s5 = int_to_ptr.vmem [resolvable:$true] %s388_s5  ;;  %s409_s26 = int_to_ptr.vmem [resolvable:$true] %s408_s26 }
 0x363   :  { %v366_v12 = vmax.f32 %v365_v10, 0.0001  ;;  %s568_s27 = scalar_lea.vmem %s389_s5, 128  ;;  %p573_p9 = scmp.lt.s32.totalorder %s389_s5, %s389_s5 }
 0x364   :  { %p569_p8 = scmp.ne.s32.totalorder %s389_s5, %s568_s27  ;;  %p574_p10 = scmp.lt.s32.totalorder %s568_s27, %s568_s27 }
 0x366   :  { %p575_p11 = por %p574_p10, %p573_p9 }
 0x368   :  { %p576_p12 = pnand %p575_p11, %p569_p8 }
 0x36a   :  { %579 = shalt.err (!%p576_p12)
}
 0x36b   :  { %s580_s11 = scalar_lea.hbm %s888_s10, 128 }
 0x36c   :  { %p581_p13 = scmp.ne.s32.totalorder %s888_s10, %s580_s11  ;;  %p584_p0 = scmp.lt.u32.totalorder %s580_s11, %s888_s10 }
 0x36e   :  { %p586_p1 = pnand %p584_p0, %p581_p13 }
 0x370   :  { %589 = shalt.err (!%p586_p1)
}
 0x371   :  { %391 = dma.vmem_to_hbm [thread:$0]  %s389_s5, 128, %s888_s10, [#allocation3]  }
 0x372   :  { %s590_s19 = scalar_lea.vmem %s409_s26, 128  ;;  %p595_p3 = scmp.lt.s32.totalorder %s409_s26, %s409_s26 }
 0x373   :  { %p591_p2 = scmp.ne.s32.totalorder %s409_s26, %s590_s19  ;;  %p596_p4 = scmp.lt.s32.totalorder %s590_s19, %s590_s19 }
 0x375   :  { %p597_p5 = por %p596_p4, %p595_p3 }
 0x377   :  { %p598_p6 = pnand %p597_p5, %p591_p2 }
 0x379   :  { %601 = shalt.err (!%p598_p6)
}
 0x37a   :  { %s602_s9 = scalar_lea.hbm %s890_s12, 128 }
 0x37b   :  { %p603_p7 = scmp.ne.s32.totalorder %s890_s12, %s602_s9  ;;  %p606_p8 = scmp.lt.u32.totalorder %s602_s9, %s890_s12 }
 0x37d   :  { %p608_p9 = pnand %p606_p8, %p603_p7 }
 0x37f   :  { %611 = shalt.err (!%p608_p9)
}
 0x380   :  { %411 = dma.vmem_to_hbm [thread:$0]  %s409_s26, 128, %s890_s12, [#allocation5]   ;;  %v367_v13 = vmin.f32 %v366_v12, 10000.0  ;;  %v375_v14 = vmax.f32 %v545_v11, 1e-05 }
 0x381   :  { %s667_s0 = smov 96   ;;  %s668_s1 = smov 64  }
 0x382   :  { %369 = vrot.lane.b32.xlu1 %v367_v13, %s667_s0  ;;  %v376_v15 = vmin.f32 %v375_v14, 1000000.0  ;;  %s669_s4 = smov [#allocation7]   ;;  %s670_s3 = smov [#allocation9]  }
 0x383   :  { %s418_s24 = sshll.u32 %s669_s4, 4  ;;  %s428_s5 = sshll.u32 %s670_s3, 4  ;;  %s419_s24 = int_to_ptr.vmem [resolvable:$true] %s418_s24  ;;  %s429_s5 = int_to_ptr.vmem [resolvable:$true] %s428_s5 }
 0x384   :  { %s612_s25 = scalar_lea.vmem %s419_s24, 128  ;;  %p617_p11 = scmp.lt.s32.totalorder %s419_s24, %s419_s24 }
 0x385   :  { %p613_p10 = scmp.ne.s32.totalorder %s419_s24, %s612_s25  ;;  %p618_p12 = scmp.lt.s32.totalorder %s612_s25, %s612_s25 }
 0x386   :  { %378 = vrot.lane.b32.xlu1 %v376_v15, %s668_s1 }
 0x387   :  { %p619_p13 = por %p618_p12, %p617_p11 }
 0x389   :  { %p620_p0 = pnand %p619_p13, %p613_p10 }
 0x3f4   :  { %v370_v16 = vpop.permute.xlu1 %369 }
 0x3f5   :  { %372 = vst.msk [vmem:[#allocation7] sm:$0xff] %vm70_vm1, %v370_v16 }
 0x3f6   :  { %623 = shalt.err (!%p620_p0)
}
 0x3f7   :  { %s624_s27 = scalar_lea.hbm %s891_s13, 128 }
 0x3f8   :  { %p625_p1 = scmp.ne.s32.totalorder %s891_s13, %s624_s27  ;;  %p628_p2 = scmp.lt.u32.totalorder %s624_s27, %s891_s13 }
 0x3fa   :  { %p630_p3 = pnand %p628_p2, %p625_p1 }
 0x3fc   :  { %633 = shalt.err (!%p630_p3)
}
 0x3fd   :  { %421 = dma.vmem_to_hbm [thread:$0]  %s419_s24, 128, %s891_s13, [#allocation8]   ;;  %v379_v17 = vpop.permute.xlu1 %378 }
 0x3fe   :  { %381 = vst.msk [vmem:[#allocation9] sm:$0xff] %vm70_vm1, %v379_v17  ;;  %s634_s16 = scalar_lea.vmem %s429_s5, 128  ;;  %p639_p5 = scmp.lt.s32.totalorder %s429_s5, %s429_s5 }
 0x3ff   :  { %p635_p4 = scmp.ne.s32.totalorder %s429_s5, %s634_s16  ;;  %p640_p6 = scmp.lt.s32.totalorder %s634_s16, %s634_s16 }
 0x401   :  { %p641_p7 = por %p640_p6, %p639_p5 }
 0x403   :  { %p642_p8 = pnand %p641_p7, %p635_p4 }
 0x405   :  { %645 = shalt.err (!%p642_p8)
}
 0x406   :  { %s646_s19 = scalar_lea.hbm %s892_s14, 128 }
 0x407   :  { %p647_p9 = scmp.ne.s32.totalorder %s892_s14, %s646_s19  ;;  %p650_p10 = scmp.lt.u32.totalorder %s646_s19, %s892_s14 }
 0x409   :  { %p652_p11 = pnand %p650_p10, %p647_p9 }
 0x40b   :  { %655 = shalt.err (!%p652_p11)
}
 0x40c   :  { %431 = dma.vmem_to_hbm [thread:$0]  %s429_s5, 128, %s892_s14, [#allocation8]  }
 0x40d   :  { %656 = dma.done.wait [#allocation3], 128  }
 0x40e   :  { %657 = vsyncadd [#allocation3], 4294967168 }
 0x40f   :  { %658 = dma.done.wait [#allocation5], 256  }
 0x410   :  { %659 = vsyncadd [#allocation5], 4294967040 }
 0x411   :  { %660 = dma.done.wait [#allocation8], 256  }
 0x412   :  { %661 = vsyncadd [#allocation8], 4294967040 }
 0x413   :  { %447 = vsyncpa [#allocation3], 1 }
 0x414   :  { %448 = vsyncpa [#allocation5], 1 }
 0x415   :  { %449 = vsyncpa [#allocation8], 1 }

</bundles_post_ra>
